<compile_context>
chip_gen: v6e
topology: v6e:2x2x1
jax: 0.10.0
libtpu: 0.0.40
codegen_flags: <defaults>
</compile_context>

<pallas_src>
import functools

import jax
import jax.numpy as jnp
from jax.experimental import pallas as pl
from jax.experimental.pallas import tpu as pltpu

BN_EPS = 1e-5
# f32 for exact parity with the f32 reference at tiny shapes; flip to
# jnp.bfloat16 on v6e/v7x production shapes (halves slab/weight bytes, bf16 MXU).
MXU_DTYPE = jnp.float32


def convlayer_kernel(slab_ref, w0_ref, w1c_ref, w2_ref, chmap_ref, gb_ref,
                     out_ref, *, img_h, spatial_w):
    """Fused 3x3 conv (banded matmuls) + BN(train) + 1x1 skip + ReLU.

    slab_ref : (N*(H+2), (W+2)*Cin)   replicate-padded NHWC input, lane-dense
    w0_ref   : ((W+2)*Cin, W*Cout)    banded conv map for kh=0
    w1c_ref  : ((W+2)*Cin, 2*W*Cout)  [kh=1 conv map | 1x1-skip map] (128-split)
    w2_ref   : ((W+2)*Cin, W*Cout)    banded conv map for kh=2
    chmap_ref: (W*Cout, W*Cout)       P[p,q] = 1 iff channel(p) == channel(q)
    gb_ref   : (2, W*Cout)            [gamma; beta], pre-broadcast to lanes
    out_ref  : (N*H, W*Cout)          lane-dense output block
    """
    rows_out, lanes = out_ref.shape
    n_img = rows_out // img_h
    h_pad = img_h + 2

    w0 = w0_ref[...]
    w1c = w1c_ref[...]
    w2 = w2_ref[...]

    conv_parts = []
    skip_parts = []
    for i in range(n_img):                          # static loop; N is tiny here
        base = i * h_pad
        x0 = slab_ref[base + 0:base + 0 + img_h, :]
        x1 = slab_ref[base + 1:base + 1 + img_h, :]
        x2 = slab_ref[base + 2:base + 2 + img_h, :]
        fused1 = jnp.dot(x1, w1c, preferred_element_type=jnp.float32)
        conv_i = (jnp.dot(x0, w0, preferred_element_type=jnp.float32)
                  + fused1[:, :lanes]               # split on 128-lane tile edge
                  + jnp.dot(x2, w2, preferred_element_type=jnp.float32))
        conv_parts.append(conv_i)
        skip_parts.append(fused1[:, lanes:])
    conv = conv_parts[0] if n_img == 1 else jnp.concatenate(conv_parts, axis=0)
    skip = skip_parts[0] if n_img == 1 else jnp.concatenate(skip_parts, axis=0)

    # BatchNorm2d (training) stats on the MXU: row-reduce via ones-dot, then
    # per-channel reduce + lane re-broadcast via the channel-mixing map.
    ones_row = jnp.ones((1, rows_out), jnp.float32)
    s_lane = jnp.dot(ones_row, conv, preferred_element_type=jnp.float32)
    ss_lane = jnp.dot(ones_row, conv * conv, preferred_element_type=jnp.float32)
    m_total = jnp.float32(rows_out * spatial_w)                 # = N*H*W
    mu = jnp.dot(s_lane, chmap_ref[...],
                 preferred_element_type=jnp.float32) / m_total  # (1, W*Cout)
    ex2 = jnp.dot(ss_lane, chmap_ref[...],
                  preferred_element_type=jnp.float32) / m_total
    var = jnp.maximum(ex2 - mu * mu, 0.0)          # clamp single-pass cancellation

    scale = gb_ref[0:1, :] * jax.lax.rsqrt(var + BN_EPS)        # (1, W*Cout)
    shift = gb_ref[1:2, :] - mu * scale

    # normalize + affine + residual skip + ReLU on full 128-lane vregs,
    # then one full-lane store (no masked vst, no repack).
    out_ref[...] = jnp.maximum(conv * scale + shift + skip, 0.0)


def convlayer_forward(x_nchw, w_conv_oihw, w_skip_oihw, gamma, beta):
    """Wrapper: NCHW in / NCHW out, matching the PyTorch module."""
    N, Cin, H, W = x_nchw.shape
    Cout = w_conv_oihw.shape[0]
    lanes = W * Cout

    # NCHW -> NHWC, replicate pad (padding=1, padding_mode='replicate'), then
    # fold (W+2, Cin) into the lane dim. One padded slab — no 9x im2col copy.
    x_nhwc = jnp.transpose(x_nchw, (0, 2, 3, 1)).astype(jnp.float32)
    x_pad = jnp.pad(x_nhwc, ((0, 0), (1, 1), (1, 1), (0, 0)), mode="edge")
    slab = x_pad.reshape(N * (H + 2), (W + 2) * Cin).astype(MXU_DTYPE)

    # Banded (Toeplitz-in-w) weight maps, one per kh:
    #   Wk[(w+kw)*Cin + ci, w*Cout + co] = w_conv[co, ci, kh, kw]
    eye_w = jnp.eye(W, dtype=jnp.float32)
    wc = w_conv_oihw.astype(jnp.float32)

    def band_map(kh):
        m = jnp.zeros(((W + 2) * Cin, lanes), jnp.float32)
        for kw in range(3):
            m = m.at[kw * Cin:kw * Cin + W * Cin, :].add(
                jnp.kron(eye_w, wc[:, :, kh, kw].T))
        return m

    w0, w1, w2 = band_map(0), band_map(1), band_map(2)

    # 1x1-skip weights as a centre-tap banded map, concatenated onto the kh=1
    # conv map so the in-kernel conv/skip split lands on a 128-lane tile edge.
    w_skip2 = w_skip_oihw[:, :, 0, 0].astype(jnp.float32)       # (Cout, Cin)
    wskip = jnp.zeros(((W + 2) * Cin, lanes), jnp.float32)
    wskip = wskip.at[Cin:Cin + W * Cin, :].add(jnp.kron(eye_w, w_skip2.T))
    w1c = jnp.concatenate([w1, wskip], axis=1)                  # (.., 2*W*Cout)

    # Channel-mixing map: one dot both reduces lane sums over w and broadcasts
    # per-channel stats back to the (w, co) lane pattern.
    chmap = jnp.kron(jnp.ones((W, W), jnp.float32),
                     jnp.eye(Cout, dtype=jnp.float32))          # (W*Cout, W*Cout)

    # gamma/beta packed into ONE operand, pre-broadcast to the lane pattern.
    gb = jnp.stack([jnp.tile(gamma.astype(jnp.float32), W),
                    jnp.tile(beta.astype(jnp.float32), W)], axis=0)  # (2, W*Cout)

    vmem = pl.BlockSpec(memory_space=pltpu.MemorySpace.VMEM)
    kern = functools.partial(convlayer_kernel, img_h=H, spatial_w=W)
    out_flat = pl.pallas_call(
        kern,
        out_shape=jax.ShapeDtypeStruct((N * H, lanes), jnp.float32),
        in_specs=[vmem] * 6,
        out_specs=vmem,
    )(slab, w0.astype(MXU_DTYPE), w1c.astype(MXU_DTYPE), w2.astype(MXU_DTYPE),
      chmap, gb)

    # (N*H, W*Cout) -> NHWC (free contiguous reshape) -> NCHW to match PyTorch.
    return jnp.transpose(out_flat.reshape(N, H, W, Cout), (0, 3, 1, 2))


def convlayer_reference(x_nchw, w_conv_oihw, w_skip_oihw, gamma, beta):
    """Pure-JAX reference of the same forward pass (for correctness check)."""
    xpad = jnp.pad(x_nchw, ((0, 0), (0, 0), (1, 1), (1, 1)), mode="edge")
    y = jax.lax.conv_general_dilated(
        xpad, w_conv_oihw, (1, 1), "VALID",
        dimension_numbers=("NCHW", "OIHW", "NCHW"))
    mu = jnp.mean(y, axis=(0, 2, 3), keepdims=True)
    var = jnp.mean((y - mu) ** 2, axis=(0, 2, 3), keepdims=True)
    yhat = (y - mu) * jax.lax.rsqrt(var + BN_EPS)
    yhat = yhat * gamma.reshape(1, -1, 1, 1) + beta.reshape(1, -1, 1, 1)
    s = jax.lax.conv_general_dilated(
        x_nchw, w_skip_oihw, (1, 1), "VALID",
        dimension_numbers=("NCHW", "OIHW", "NCHW"))
    return jnp.maximum(yhat + s, 0.0)


if __name__ == "__main__":
    N, Cin, Cout, H, W = 2, 4, 8, 16, 16

    key = jax.random.PRNGKey(0)
    k_x, k_wc, k_ws, k_g, k_b = jax.random.split(key, 5)

    x = jax.random.normal(k_x, (N, Cin, H, W), dtype=jnp.float32)
    # Deterministic parameter init (kaiming-ish scale; shapes from nn.Conv2d).
    w_conv = jax.random.normal(k_wc, (Cout, Cin, 3, 3), dtype=jnp.float32) * 0.1
    w_skip = jax.random.normal(k_ws, (Cout, Cin, 1, 1), dtype=jnp.float32) * 0.1
    # BatchNorm affine params (default init is ones/zeros; perturb slightly so
    # the scale/shift path is actually exercised).
    gamma = 1.0 + 0.1 * jax.random.normal(k_g, (Cout,), dtype=jnp.float32)
    beta = 0.1 * jax.random.normal(k_b, (Cout,), dtype=jnp.float32)

    out = jax.block_until_ready(convlayer_forward(x, w_conv, w_skip, gamma, beta))
    ref = jax.block_until_ready(convlayer_reference(x, w_conv, w_skip, gamma, beta))

    assert out.shape == (N, Cout, H, W)
    assert jnp.allclose(out, ref, atol=1e-4, rtol=1e-4), \
        f"max abs err {float(jnp.max(jnp.abs(out - ref)))}"

    print("KERNEL_OK")
</pallas_src>

<mosaic_0001>
module attributes {stable_mosaic.version = 11 : i64} {
  func.func @convlayer_kernel(%arg0: memref<36x72xf32, #tpu.memory_space<vmem>>, %arg1: memref<72x128xf32, #tpu.memory_space<vmem>>, %arg2: memref<72x256xf32, #tpu.memory_space<vmem>>, %arg3: memref<72x128xf32, #tpu.memory_space<vmem>>, %arg4: memref<128x128xf32, #tpu.memory_space<vmem>>, %arg5: memref<2x128xf32, #tpu.memory_space<vmem>>, %arg6: memref<32x128xf32, #tpu.memory_space<vmem>>) attributes {dimension_semantics = [], scalar_prefetch = 0 : i64, scratch_operands = 0 : i64, tpu.core_type = #tpu.core_type<tc>} {
    %c0 = arith.constant 0 : index
    %c0_0 = arith.constant 0 : index
    %0 = vector.load %arg1[%c0, %c0_0] : memref<72x128xf32, #tpu.memory_space<vmem>>, vector<72x128xf32>
    %c0_1 = arith.constant 0 : index
    %c0_2 = arith.constant 0 : index
    %1 = vector.load %arg2[%c0_1, %c0_2] : memref<72x256xf32, #tpu.memory_space<vmem>>, vector<72x256xf32>
    %c0_3 = arith.constant 0 : index
    %c0_4 = arith.constant 0 : index
    %2 = vector.load %arg3[%c0_3, %c0_4] : memref<72x128xf32, #tpu.memory_space<vmem>>, vector<72x128xf32>
    %c0_5 = arith.constant 0 : index
    %c0_6 = arith.constant 0 : index
    %3 = vector.load %arg0[%c0_5, %c0_6] : memref<36x72xf32, #tpu.memory_space<vmem>>, vector<16x72xf32>
    %c1 = arith.constant 1 : index
    %c0_7 = arith.constant 0 : index
    %4 = vector.load %arg0[%c1, %c0_7] : memref<36x72xf32, #tpu.memory_space<vmem>>, vector<16x72xf32>
    %c2 = arith.constant 2 : index
    %c0_8 = arith.constant 0 : index
    %5 = vector.load %arg0[%c2, %c0_8] : memref<36x72xf32, #tpu.memory_space<vmem>>, vector<16x72xf32>
    %cst = arith.constant dense<0.000000e+00> : vector<16x256xf32>
    %6 = tpu.matmul %4, %1, %cst {dimension_numbers = #tpu.dot_dimension_numbers<[1], [0], [0], [1], [0, 0, 1, 1], [], []>} : vector<16x72xf32>, vector<72x256xf32>, vector<16x256xf32> -> vector<16x256xf32>
    %cst_9 = arith.constant dense<0.000000e+00> : vector<16x128xf32>
    %7 = tpu.matmul %3, %0, %cst_9 {dimension_numbers = #tpu.dot_dimension_numbers<[1], [0], [0], [1], [0, 0, 1, 1], [], []>} : vector<16x72xf32>, vector<72x128xf32>, vector<16x128xf32> -> vector<16x128xf32>
    %8 = vector.extract_strided_slice %6 {offsets = [0, 0], sizes = [16, 128], strides = [1, 1]} : vector<16x256xf32> to vector<16x128xf32>
    %9 = arith.addf %7, %8 : vector<16x128xf32>
    %cst_10 = arith.constant dense<0.000000e+00> : vector<16x128xf32>
    %10 = tpu.matmul %5, %2, %cst_10 {dimension_numbers = #tpu.dot_dimension_numbers<[1], [0], [0], [1], [0, 0, 1, 1], [], []>} : vector<16x72xf32>, vector<72x128xf32>, vector<16x128xf32> -> vector<16x128xf32>
    %11 = arith.addf %9, %10 : vector<16x128xf32>
    %12 = vector.extract_strided_slice %6 {offsets = [0, 128], sizes = [16, 128], strides = [1, 1]} : vector<16x256xf32> to vector<16x128xf32>
    %c18 = arith.constant 18 : index
    %c0_11 = arith.constant 0 : index
    %13 = vector.load %arg0[%c18, %c0_11] : memref<36x72xf32, #tpu.memory_space<vmem>>, vector<16x72xf32>
    %c19 = arith.constant 19 : index
    %c0_12 = arith.constant 0 : index
    %14 = vector.load %arg0[%c19, %c0_12] : memref<36x72xf32, #tpu.memory_space<vmem>>, vector<16x72xf32>
    %c20 = arith.constant 20 : index
    %c0_13 = arith.constant 0 : index
    %15 = vector.load %arg0[%c20, %c0_13] : memref<36x72xf32, #tpu.memory_space<vmem>>, vector<16x72xf32>
    %cst_14 = arith.constant dense<0.000000e+00> : vector<16x256xf32>
    %16 = tpu.matmul %14, %1, %cst_14 {dimension_numbers = #tpu.dot_dimension_numbers<[1], [0], [0], [1], [0, 0, 1, 1], [], []>} : vector<16x72xf32>, vector<72x256xf32>, vector<16x256xf32> -> vector<16x256xf32>
    %cst_15 = arith.constant dense<0.000000e+00> : vector<16x128xf32>
    %17 = tpu.matmul %13, %0, %cst_15 {dimension_numbers = #tpu.dot_dimension_numbers<[1], [0], [0], [1], [0, 0, 1, 1], [], []>} : vector<16x72xf32>, vector<72x128xf32>, vector<16x128xf32> -> vector<16x128xf32>
    %18 = vector.extract_strided_slice %16 {offsets = [0, 0], sizes = [16, 128], strides = [1, 1]} : vector<16x256xf32> to vector<16x128xf32>
    %19 = arith.addf %17, %18 : vector<16x128xf32>
    %cst_16 = arith.constant dense<0.000000e+00> : vector<16x128xf32>
    %20 = tpu.matmul %15, %2, %cst_16 {dimension_numbers = #tpu.dot_dimension_numbers<[1], [0], [0], [1], [0, 0, 1, 1], [], []>} : vector<16x72xf32>, vector<72x128xf32>, vector<16x128xf32> -> vector<16x128xf32>
    %21 = arith.addf %19, %20 : vector<16x128xf32>
    %22 = vector.extract_strided_slice %16 {offsets = [0, 128], sizes = [16, 128], strides = [1, 1]} : vector<16x256xf32> to vector<16x128xf32>
    %23 = tpu.concatenate %11, %21 in 0 : vector<16x128xf32>, vector<16x128xf32> -> vector<32x128xf32>
    %24 = tpu.concatenate %12, %22 in 0 : vector<16x128xf32>, vector<16x128xf32> -> vector<32x128xf32>
    %cst_17 = arith.constant 1.000000e+00 : f32
    %25 = vector.broadcast %cst_17 : f32 to vector<1x32xf32>
    %cst_18 = arith.constant dense<0.000000e+00> : vector<1x128xf32>
    %26 = tpu.matmul %25, %23, %cst_18 {dimension_numbers = #tpu.dot_dimension_numbers<[1], [0], [0], [1], [0, 0, 1, 1], [], []>} : vector<1x32xf32>, vector<32x128xf32>, vector<1x128xf32> -> vector<1x128xf32>
    %27 = arith.mulf %23, %23 : vector<32x128xf32>
    %cst_19 = arith.constant dense<0.000000e+00> : vector<1x128xf32>
    %28 = tpu.matmul %25, %27, %cst_19 {dimension_numbers = #tpu.dot_dimension_numbers<[1], [0], [0], [1], [0, 0, 1, 1], [], []>} : vector<1x32xf32>, vector<32x128xf32>, vector<1x128xf32> -> vector<1x128xf32>
    %c0_20 = arith.constant 0 : index
    %c0_21 = arith.constant 0 : index
    %29 = vector.load %arg4[%c0_20, %c0_21] : memref<128x128xf32, #tpu.memory_space<vmem>>, vector<128x128xf32>
    %cst_22 = arith.constant dense<0.000000e+00> : vector<1x128xf32>
    %30 = tpu.matmul %26, %29, %cst_22 {dimension_numbers = #tpu.dot_dimension_numbers<[1], [0], [0], [1], [0, 0, 1, 1], [], []>} : vector<1x128xf32>, vector<128x128xf32>, vector<1x128xf32> -> vector<1x128xf32>
    %cst_23 = arith.constant 5.120000e+02 : f32
    %31 = vector.broadcast %cst_23 : f32 to vector<1x128xf32>
    %32 = arith.divf %30, %31 : vector<1x128xf32>
    %c0_24 = arith.constant 0 : index
    %c0_25 = arith.constant 0 : index
    %33 = vector.load %arg4[%c0_24, %c0_25] : memref<128x128xf32, #tpu.memory_space<vmem>>, vector<128x128xf32>
    %cst_26 = arith.constant dense<0.000000e+00> : vector<1x128xf32>
    %34 = tpu.matmul %28, %33, %cst_26 {dimension_numbers = #tpu.dot_dimension_numbers<[1], [0], [0], [1], [0, 0, 1, 1], [], []>} : vector<1x128xf32>, vector<128x128xf32>, vector<1x128xf32> -> vector<1x128xf32>
    %cst_27 = arith.constant 5.120000e+02 : f32
    %35 = vector.broadcast %cst_27 : f32 to vector<1x128xf32>
    %36 = arith.divf %34, %35 : vector<1x128xf32>
    %37 = arith.mulf %32, %32 : vector<1x128xf32>
    %38 = arith.subf %36, %37 : vector<1x128xf32>
    %cst_28 = arith.constant 0.000000e+00 : f32
    %39 = vector.broadcast %cst_28 : f32 to vector<1x128xf32>
    %40 = arith.maximumf %38, %39 : vector<1x128xf32>
    %c0_29 = arith.constant 0 : index
    %c0_30 = arith.constant 0 : index
    %41 = vector.load %arg5[%c0_29, %c0_30] : memref<2x128xf32, #tpu.memory_space<vmem>>, vector<1x128xf32>
    %cst_31 = arith.constant 9.99999974E-6 : f32
    %42 = vector.broadcast %cst_31 : f32 to vector<1x128xf32>
    %43 = arith.addf %40, %42 : vector<1x128xf32>
    %44 = math.rsqrt %43 : vector<1x128xf32>
    %45 = arith.mulf %41, %44 : vector<1x128xf32>
    %c1_32 = arith.constant 1 : index
    %c0_33 = arith.constant 0 : index
    %46 = vector.load %arg5[%c1_32, %c0_33] : memref<2x128xf32, #tpu.memory_space<vmem>>, vector<1x128xf32>
    %47 = arith.mulf %32, %45 : vector<1x128xf32>
    %48 = arith.subf %46, %47 : vector<1x128xf32>
    %49 = vector.broadcast %45 : vector<1x128xf32> to vector<32x128xf32>
    %50 = arith.mulf %23, %49 : vector<32x128xf32>
    %51 = vector.broadcast %48 : vector<1x128xf32> to vector<32x128xf32>
    %52 = arith.addf %50, %51 : vector<32x128xf32>
    %53 = arith.addf %52, %24 : vector<32x128xf32>
    %cst_34 = arith.constant 0.000000e+00 : f32
    %54 = vector.broadcast %cst_34 : f32 to vector<32x128xf32>
    %55 = arith.maximumf %53, %54 : vector<32x128xf32>
    %c0_35 = arith.constant 0 : index
    %c0_36 = arith.constant 0 : index
    %56 = vector.load %arg6[%c0_35, %c0_36] : memref<32x128xf32, #tpu.memory_space<vmem>>, vector<32x128xf32>
    tpu.vector_store %arg6[%c0_35, %c0_36], %55 {strides = array<i32>} : memref<32x128xf32, #tpu.memory_space<vmem>>, vector<32x128xf32>,
    return
  }
}

</mosaic_0001>

<bundles_post_ra>
// kernel: tpu_custom_call.1
= control target key start
LH: loop header
LB: loop body
LE: loop exit
PB: predicated region body
PF: predicated region fallthrough
CT: control target
= control target key end

     0   :  { %11 = vsyncpa [#allocation3], 0  ;;  %s1733_s0 = inlined_call_operand.hbm [shape: f32[36,72], index: 0, kind: input, shape index: {}]   ;;  %s1734_s1 = inlined_call_operand.hbm [shape: f32[72,128], index: 1, kind: input, shape index: {}]   ;;  %s1735_s2 = inlined_call_operand.hbm [shape: f32[72,256], index: 2, kind: input, shape index: {}]   ;;  %s1736_s3 = inlined_call_operand.hbm [shape: f32[72,128], index: 3, kind: input, shape index: {}]   ;;  %s1737_s4 = inlined_call_operand.hbm [shape: f32[128,128], index: 4, kind: input, shape index: {}]   ;;  %s1738_s5 = inlined_call_operand.vmem [shape: f32[2,128], index: 5, kind: input, shape index: {}]   ;;  %s1739_s6 = inlined_call_operand.hbm [shape: f32[32,128], index: 6, kind: output, shape index: {}]  }
   0x1   :  { %12 = vsyncpa [#allocation6], 0 }
   0x2   :  { %13 = vsyncpa [#allocation9], 0 }
   0x3   :  { %14 = vsyncpa [#allocation4], 0  ;;  %s1420_s21 = smov [#allocation5]   ;;  %s1421_s23 = smov [#allocation8]  }
   0x4   :  { %s32_s22 = sshll.u32 %s1420_s21, 4  ;;  %s56_s24 = sshll.u32 %s1421_s23, 4  ;;  %s33_s22 = int_to_ptr.vmem [resolvable:$true] %s32_s22  ;;  %s57_s24 = int_to_ptr.vmem [resolvable:$true] %s56_s24 }
   0x5   :  { %s1300_s25 = scalar_lea.vmem %s33_s22, 1152  ;;  %p1305_p1 = scmp.lt.s32.totalorder %s33_s22, %s33_s22 }
   0x6   :  { %p1301_p0 = scmp.ne.s32.totalorder %s33_s22, %s1300_s25  ;;  %p1306_p2 = scmp.lt.s32.totalorder %s1300_s25, %s1300_s25 }
   0x8   :  { %p1307_p3 = por %p1306_p2, %p1305_p1 }
   0xa   :  { %p1308_p4 = pnand %p1307_p3, %p1301_p0 }
   0xc   :  { %1311 = shalt.err (!%p1308_p4)
}
   0xd   :  { %s1422_s26 = smov 128   ;;  %s1423_s27 = smov 8  }
   0xe   :  { %38 = dma.hbm_to_vmem [thread:$0]  %s1734_s1, 1152, %s33_s22, [#allocation6], %s1422_s26, %s1422_s26, %s1423_s27  }
   0xf   :  { %s1320_s30 = scalar_lea.vmem %s57_s24, 1152  ;;  %p1325_p6 = scmp.lt.s32.totalorder %s57_s24, %s57_s24 }
  0x10   :  { %p1321_p5 = scmp.ne.s32.totalorder %s57_s24, %s1320_s30  ;;  %p1326_p7 = scmp.lt.s32.totalorder %s1320_s30, %s1320_s30 }
  0x12   :  { %p1327_p8 = por %p1326_p7, %p1325_p6 }
  0x14   :  { %p1328_p9 = pnand %p1327_p8, %p1321_p5 }
  0x16   :  { %1331 = shalt.err (!%p1328_p9)
}
  0x17   :  { %62 = dma.hbm_to_vmem [thread:$0]  %s1736_s3, 1152, %s57_s24, [#allocation9], %s1422_s26, %s1422_s26, %s1423_s27  }
  0x18   :  { %s1424_s9 = smov [#allocation2]   ;;  %s1425_s11 = smov [#allocation7]  }
  0x19   :  { %s20_s10 = sshll.u32 %s1424_s9, 4  ;;  %s44_s12 = sshll.u32 %s1425_s11, 4  ;;  %s21_s10 = int_to_ptr.vmem [resolvable:$true] %s20_s10  ;;  %s45_s12 = int_to_ptr.vmem [resolvable:$true] %s44_s12 }
  0x1a   :  { %s1340_s1 = scalar_lea.vmem %s21_s10, 640  ;;  %p1345_p11 = scmp.lt.s32.totalorder %s21_s10, %s21_s10 }
  0x1b   :  { %p1341_p10 = scmp.ne.s32.totalorder %s21_s10, %s1340_s1  ;;  %p1346_p12 = scmp.lt.s32.totalorder %s1340_s1, %s1340_s1 }
  0x1d   :  { %p1347_p13 = por %p1346_p12, %p1345_p11 }
  0x1f   :  { %p1348_p0 = pnand %p1347_p13, %p1341_p10 }
  0x21   :  { %1351 = shalt.err (!%p1348_p0)
}
  0x22   :  { %26 = dma.hbm_to_vmem [thread:$0]  %s1733_s0, 640, %s21_s10, [#allocation3], %s1422_s26, %s1422_s26, %s1423_s27  }
  0x23   :  { %s1360_s3 = scalar_lea.vmem %s45_s12, 2304  ;;  %p1365_p2 = scmp.lt.s32.totalorder %s45_s12, %s45_s12 }
  0x24   :  { %p1361_p1 = scmp.ne.s32.totalorder %s45_s12, %s1360_s3  ;;  %p1366_p3 = scmp.lt.s32.totalorder %s1360_s3, %s1360_s3 }
  0x26   :  { %p1367_p4 = por %p1366_p3, %p1365_p2 }
  0x28   :  { %p1368_p5 = pnand %p1367_p4, %p1361_p1 }
  0x2a   :  { %1371 = shalt.err (!%p1368_p5)
}
  0x2b   :  { %s1426_s15 = smov 256   ;;  %s1427_s16 = smov 16  }
  0x2c   :  { %50 = dma.hbm_to_vmem [thread:$0]  %s1735_s2, 2304, %s45_s12, [#allocation6], %s1426_s15, %s1426_s15, %s1427_s16  }
  0x2d   :  { %s1428_s19 = smov [#allocation10]  }
  0x2e   :  { %s68_s20 = sshll.u32 %s1428_s19, 4  ;;  %s69_s20 = int_to_ptr.vmem [resolvable:$true] %s68_s20 }
  0x2f   :  { %s1380_s21 = scalar_lea.vmem %s69_s20, 2048  ;;  %p1385_p7 = scmp.lt.s32.totalorder %s69_s20, %s69_s20 }
  0x30   :  { %p1381_p6 = scmp.ne.s32.totalorder %s69_s20, %s1380_s21  ;;  %p1386_p8 = scmp.lt.s32.totalorder %s1380_s21, %s1380_s21 }
  0x32   :  { %p1387_p9 = por %p1386_p8, %p1385_p7 }
  0x34   :  { %p1388_p10 = pnand %p1387_p9, %p1381_p6 }
  0x36   :  { %1391 = shalt.err (!%p1388_p10)
}
  0x37   :  { %74 = dma.hbm_to_vmem [thread:$0]  %s1737_s4, 2048, %s69_s20, [#allocation9], %s1422_s26, %s1422_s26, %s1423_s27  }
  0x38   :  { %1412 = dma.done.wait [#allocation3], 640  }
  0x39   :  { %1413 = vsyncadd [#allocation3], 4294966656 }
  0x3a   :  { %1414 = dma.done.wait [#allocation6], 3456  }
  0x3b   :  { %1415 = vsyncadd [#allocation6], 4294963840 }
  0x3c   :  { %1416 = dma.done.wait [#allocation9], 3200  }
  0x3d   :  { %1417 = vsyncadd [#allocation9], 4294964096  ;;  %v1429_v0 = vmov 0.0   ;;  %v1496_v1 = vld [vmem:[#allocation7 + $0x88] sm:$0xff]  ;;  %v1498_v2 = vld [vmem:[#allocation5 + $0x40] sm:$0xff]  ;;  %vm134_vm0 = vcmask 588800  }
  0x3e   :  { %205 = vmatprep.mubr.f32.mxu0 %v1429_v0  ;;  %v1500_v3 = vld [vmem:[#allocation7 + $0x80] sm:$0xff]  ;;  %155 = vmatprep.subr.mxu0 %v1496_v1  ;;  %v1504_v4 = vld [vmem:[#allocation7 + $0x78] sm:$0xff]  ;;  %v1506_v5 = vld [vmem:[#allocation5 + $0x38] sm:$0xff]  ;;  %vm1430_vm1 = vmmov 0   ;;  %vm635_vm2 = vcmask 261120   ;;  %s1432_s25 = smov [#allocation11]  }
  0x3f   :  { %1101 = vmatprep.subr.mxu1 %v1498_v2  ;;  %v1508_v6 = vld [vmem:[#allocation7 + $0x70] sm:$0xff]  ;;  %156 = vmatpush1.msra.mxu0 %v1500_v3  ;;  %v1512_v7 = vld [vmem:[#allocation7 + $0x68] sm:$0xff]  ;;  %v1518_v9 = vld [vmem:[#allocation7 + $0x60] sm:$0xff]  ;;  %s985_s28 = sshll.u32 %s1432_s25, 4  ;;  %s986_s28 = int_to_ptr.vmem [resolvable:$true] %s985_s28 }
  0x40   :  { %1102 = vmatpush3.msra.mxu1 %v1498_v2  ;;  %v1514_v8 = vld [vmem:[#allocation5 + $0x30] sm:$0xff]  ;;  %157 = vmatprep.subr.mxu0 %v1504_v4  ;;  %v1522_v10 = vld [vmem:[#allocation7 + $0x58] sm:$0xff]  ;;  %v1524_v11 = vld [vmem:[#allocation5 + $0x28] sm:$0xff]  ;;  %p1397_p12 = scmp.lt.s32.totalorder %s986_s28, %s986_s28 }
  0x41   :  { %1103 = vmatprep.subr.mxu1 %v1506_v5  ;;  %158 = vmatpush1.msra.mxu0 %v1508_v6  ;;  %v1528_v12 = vld [vmem:[#allocation7 + $0x50] sm:$0xff]  ;;  %v1532_v13 = vld [vmem:[#allocation7 + $0x48] sm:$0xff]  ;;  %v1534_v14 = vld [vmem:[#allocation5 + $0x20] sm:$0xff] }
  0x42   :  { %1104 = vmatpush3.msra.mxu1 %v1506_v5  ;;  %159 = vmatprep.subr.mxu0 %v1512_v7  ;;  %v1538_v15 = vld [vmem:[#allocation7 + $0x40] sm:$0xff]  ;;  %v1542_v16 = vld [vmem:[#allocation7 + $0x38] sm:$0xff]  ;;  %v1544_v17 = vld [vmem:[#allocation5 + $0x18] sm:$0xff] }
  0x43   :  { %1105 = vmatprep.subr.mxu1 %v1514_v8  ;;  %160 = vmatpush1.msra.mxu0 %v1518_v9  ;;  %v1548_v18 = vld [vmem:[#allocation7 + $0x30] sm:$0xff]  ;;  %v1552_v19 = vld [vmem:[#allocation7 + $0x28] sm:$0xff]  ;;  %v1558_v21 = vld [vmem:[#allocation7 + $0x20] sm:$0xff] }
  0x44   :  { %1106 = vmatpush3.msra.mxu1 %v1514_v8  ;;  %161 = vmatprep.subr.mxu0 %v1522_v10  ;;  %v1554_v20 = vld [vmem:[#allocation5 + $0x10] sm:$0xff]  ;;  %v1562_v22 = vld [vmem:[#allocation7 + $0x18] sm:$0xff]  ;;  %v1564_v23 = vld [vmem:[#allocation5 + $0x8] sm:$0xff] }
  0x45   :  { %1107 = vmatprep.subr.mxu1 %v1524_v11  ;;  %162 = vmatpush1.msra.mxu0 %v1528_v12  ;;  %v1568_v24 = vld [vmem:[#allocation7 + $0x10] sm:$0xff]  ;;  %v1572_v25 = vld [vmem:[#allocation7 + $0x8] sm:$0xff]  ;;  %v1574_v26 = vld [vmem:[#allocation5] sm:$0xff] }
  0x46   :  { %1108 = vmatpush3.msra.mxu1 %v1524_v11  ;;  %163 = vmatprep.subr.mxu0 %v1532_v13  ;;  %v1578_v27 = vld [vmem:[#allocation7] sm:$0xff]  ;;  %v128_v28 = vld [vmem:[#allocation2] sm:$0xff]  ;;  %v129_v30 = vld [vmem:[#allocation2 + $0x8] sm:$0xff] }
  0x47   :  { %1109 = vmatprep.subr.mxu1 %v1534_v14  ;;  %164 = vmatpush1.msra.mxu0 %v1538_v15  ;;  %v130_v29 = vld [vmem:[#allocation2 + $0x1] sm:$0xff]  ;;  %v126_v32 = vld [vmem:[#allocation8 + $0x38] sm:$0xff]  ;;  %v131_v33 = vld [vmem:[#allocation2 + $0x9] sm:$0xff] }
  0x48   :  { %1110 = vmatpush3.msra.mxu1 %v1534_v14  ;;  %165 = vmatprep.subr.mxu0 %v1542_v16  ;;  %v127_v31 = vld [vmem:[#allocation8 + $0x40] sm:$0xff]  ;;  %v125_v34 = vld [vmem:[#allocation8 + $0x30] sm:$0xff]  ;;  %v124_v35 = vld [vmem:[#allocation8 + $0x28] sm:$0xff] }
  0x49   :  { %1111 = vmatprep.subr.mxu1 %v1544_v17  ;;  %166 = vmatpush1.msra.mxu0 %v1548_v18  ;;  %v123_v36 = vld [vmem:[#allocation8 + $0x20] sm:$0xff]  ;;  %v122_v37 = vld [vmem:[#allocation8 + $0x18] sm:$0xff]  ;;  %v121_v38 = vld [vmem:[#allocation8 + $0x10] sm:$0xff] }
  0x4a   :  { %1112 = vmatpush3.msra.mxu1 %v1544_v17  ;;  %167 = vmatprep.subr.mxu0 %v1552_v19  ;;  %v120_v39 = vld [vmem:[#allocation8 + $0x8] sm:$0xff]  ;;  %v119_v40 = vld [vmem:[#allocation8] sm:$0xff]  ;;  %v384_v43 = vld [vmem:[#allocation2 + $0x13] sm:$0xff] }
  0x4b   :  { %1113 = vmatprep.subr.mxu1 %v1554_v20  ;;  %168 = vmatpush1.msra.mxu0 %v1558_v21  ;;  %v132_v41 = vld [vmem:[#allocation2 + $0x2] sm:$0xff]  ;;  %v133_v42 = vld [vmem:[#allocation2 + $0xa] sm:$0xff]  ;;  %v382_v45 = vld [vmem:[#allocation2 + $0x12] sm:$0xff] }
  0x4c   :  { %1114 = vmatpush3.msra.mxu1 %v1554_v20  ;;  %169 = vmatprep.subr.mxu0 %v1562_v22  ;;  %v385_v44 = vld [vmem:[#allocation2 + $0x1b] sm:$0xff] }
  0x4d   :  { %1115 = vmatprep.subr.mxu1 %v1564_v23  ;;  %170 = vmatpush1.msra.mxu0 %v1568_v24  ;;  %v386_v46 = vld [vmem:[#allocation2 + $0x14] sm:$0xff]  ;;  %v387_v48 = vld [vmem:[#allocation2 + $0x1c] sm:$0xff] }
  0x4e   :  { %1116 = vmatpush3.msra.mxu1 %v1564_v23  ;;  %171 = vmatprep.subr.mxu0 %v1572_v25  ;;  %v383_v47 = vld [vmem:[#allocation2 + $0x1a] sm:$0xff] }
  0x4f   :  { %1117 = vmatprep.subr.mxu1 %v1574_v26  ;;  %172 = vmatpush1.msra.mxu0 %v1578_v27 }
  0x50   :  { %1118 = vmatpush3.msra.mxu1 %v1574_v26  ;;  %1119 = vmatprep.mubr.msk.f32.mxu1 %vm134_vm0, %v128_v28  ;;  %v785_v28 = vld [vmem:[#allocation10 + $0x10] sm:$0xff] }
  0x51   :  { %999 = vmatmul.mubr.msk.f32.vlgmr.msra.gmra.mxu0 %vm134_vm0, %v130_v29  ;;  %1120 = vmatmul.mubr.msk.f32.vlgmr.msra.gmra.mxu1 %vm134_vm0, %v129_v30  ;;  %v784_v29 = vld [vmem:[#allocation10 + $0x8] sm:$0xff]  ;;  %v783_v30 = vld [vmem:[#allocation10] sm:$0xff] }
  0x52   :  { %1122 = vmatprep.subr.mxu0 %v127_v31  ;;  %408 = vmatprep.subr.mxu1 %v1496_v1 }
  0x53   :  { %1123 = vmatpush3.msra.mxu0 %v127_v31  ;;  %409 = vmatpush1.msra.mxu1 %v1500_v3 }
  0x54   :  { %1124 = vmatprep.subr.mxu0 %v126_v32  ;;  %410 = vmatprep.subr.mxu1 %v1504_v4 }
  0x55   :  { %211 = vmatprep.mubr.f32.mxu0 %v1429_v0  ;;  %1125 = vmatpush3.msra.mxu0 %v126_v32 }
  0x56   :  { %411 = vmatpush1.msra.mxu1 %v1508_v6  ;;  %1000 = vmatmul.mubr.msk.f32.gmra.mxu0 %vm134_vm0, %v131_v33 }
  0x57   :  { %1126 = vmatprep.subr.mxu0 %v125_v34  ;;  %412 = vmatprep.subr.mxu1 %v1512_v7 }
  0x58   :  { %1127 = vmatpush3.msra.mxu0 %v125_v34  ;;  %413 = vmatpush1.msra.mxu1 %v1518_v9 }
  0x59   :  { %1128 = vmatprep.subr.mxu0 %v124_v35  ;;  %414 = vmatprep.subr.mxu1 %v1522_v10 }
  0x5a   :  { %1129 = vmatpush3.msra.mxu0 %v124_v35  ;;  %415 = vmatpush1.msra.mxu1 %v1528_v12 }
  0x5b   :  { %1130 = vmatprep.subr.mxu0 %v123_v36  ;;  %416 = vmatprep.subr.mxu1 %v1532_v13 }
  0x5c   :  { %1131 = vmatpush3.msra.mxu0 %v123_v36  ;;  %417 = vmatpush1.msra.mxu1 %v1538_v15  ;;  %v1431_v15 = vmov 1.0  }
  0x5d   :  { %1132 = vmatprep.subr.mxu0 %v122_v37  ;;  %418 = vmatprep.subr.mxu1 %v1542_v16  ;;  %v797_v16 = vld [vmem:[#allocation10 + $0x70] sm:$0xff] }
  0x5e   :  { %1133 = vmatpush3.msra.mxu0 %v122_v37  ;;  %419 = vmatpush1.msra.mxu1 %v1548_v18  ;;  %v795_v18 = vld [vmem:[#allocation10 + $0x60] sm:$0xff] }
  0x5f   :  { %1134 = vmatprep.subr.mxu0 %v121_v38  ;;  %420 = vmatprep.subr.mxu1 %v1552_v19  ;;  %v794_v19 = vld [vmem:[#allocation10 + $0x58] sm:$0xff] }
  0x60   :  { %1135 = vmatpush3.msra.mxu0 %v121_v38  ;;  %421 = vmatpush1.msra.mxu1 %v1558_v21  ;;  %v792_v21 = vld [vmem:[#allocation10 + $0x48] sm:$0xff] }
  0x61   :  { %1136 = vmatprep.subr.mxu0 %v120_v39  ;;  %422 = vmatprep.subr.mxu1 %v1562_v22  ;;  %v791_v22 = vld [vmem:[#allocation10 + $0x40] sm:$0xff] }
  0x62   :  { %1137 = vmatpush3.msra.mxu0 %v120_v39  ;;  %423 = vmatpush1.msra.mxu1 %v1568_v24  ;;  %v789_v24 = vld [vmem:[#allocation10 + $0x30] sm:$0xff] }
  0x63   :  { %1138 = vmatprep.subr.mxu0 %v119_v40  ;;  %424 = vmatprep.subr.mxu1 %v1572_v25  ;;  %v788_v25 = vld [vmem:[#allocation10 + $0x28] sm:$0xff] }
  0x64   :  { %1139 = vmatpush3.msra.mxu0 %v119_v40  ;;  %1140 = vmatprep.mubr.msk.f32.mxu0 %vm134_vm0, %v132_v41 }
  0x65   :  { %425 = vmatpush1.msra.mxu1 %v1578_v27  ;;  %1141 = vmatmul.mubr.msk.f32.vlgmr.msra.gmra.mxu0 %vm134_vm0, %v133_v42  ;;  %v786_v27 = vld [vmem:[#allocation10 + $0x18] sm:$0xff] }
  0x66   :  { %458 = vmatprep.mubr.f32.mxu1 %v1429_v0  ;;  %1143 = vmatprep.subr.mxu0 %v1498_v2 }
  0x67   :  { %1164 = vmatprep.subr.mxu1 %v127_v31  ;;  %1005 = vmatmul.mubr.msk.f32.vlgmr.msra.gmra.mxu1 %vm134_vm0, %v384_v43 }
  0x68   :  { %1144 = vmatpush3.msra.mxu0 %v1498_v2  ;;  %1165 = vmatpush3.msra.mxu1 %v127_v31 }
  0x69   :  { %1145 = vmatprep.subr.mxu0 %v1506_v5  ;;  %1166 = vmatprep.subr.mxu1 %v126_v32 }
  0x6a   :  { %1146 = vmatpush3.msra.mxu0 %v1506_v5  ;;  %1167 = vmatpush3.msra.mxu1 %v126_v32 }
  0x6b   :  { %1147 = vmatprep.subr.mxu0 %v1514_v8  ;;  %1168 = vmatprep.subr.mxu1 %v125_v34 }
  0x6c   :  { %1148 = vmatpush3.msra.mxu0 %v1514_v8  ;;  %1169 = vmatpush3.msra.mxu1 %v125_v34 }
  0x6d   :  { %1149 = vmatprep.subr.mxu0 %v1524_v11  ;;  %1170 = vmatprep.subr.mxu1 %v124_v35 }
  0x6e   :  { %1150 = vmatpush3.msra.mxu0 %v1524_v11  ;;  %1171 = vmatpush3.msra.mxu1 %v124_v35 }
  0x6f   :  { %1151 = vmatprep.subr.mxu0 %v1534_v14  ;;  %1172 = vmatprep.subr.mxu1 %v123_v36 }
  0x70   :  { %1152 = vmatpush3.msra.mxu0 %v1534_v14  ;;  %1173 = vmatpush3.msra.mxu1 %v123_v36  ;;  %v798_v14 = vld [vmem:[#allocation10 + $0x78] sm:$0xff] }
  0x71   :  { %1153 = vmatprep.subr.mxu0 %v1544_v17  ;;  %1174 = vmatprep.subr.mxu1 %v122_v37 }
  0x72   :  { %1154 = vmatpush3.msra.mxu0 %v1544_v17  ;;  %1175 = vmatpush3.msra.mxu1 %v122_v37  ;;  %v796_v17 = vld [vmem:[#allocation10 + $0x68] sm:$0xff] }
  0x73   :  { %1155 = vmatprep.subr.mxu0 %v1554_v20  ;;  %1176 = vmatprep.subr.mxu1 %v121_v38 }
  0x74   :  { %464 = vmatprep.mubr.f32.mxu1 %v1429_v0  ;;  %1156 = vmatpush3.msra.mxu0 %v1554_v20  ;;  %v793_v20 = vld [vmem:[#allocation10 + $0x50] sm:$0xff] }
  0x75   :  { %1177 = vmatpush3.msra.mxu1 %v121_v38  ;;  %1157 = vmatprep.subr.mxu0 %v1564_v23 }
  0x76   :  { %1006 = vmatmul.mubr.msk.f32.gmra.mxu1 %vm134_vm0, %v385_v44  ;;  %1178 = vmatprep.subr.mxu1 %v120_v39 }
  0x77   :  { %1158 = vmatpush3.msra.mxu0 %v1564_v23  ;;  %1179 = vmatpush3.msra.mxu1 %v120_v39  ;;  %v790_v23 = vld [vmem:[#allocation10 + $0x38] sm:$0xff] }
  0x78   :  { %1159 = vmatprep.subr.mxu0 %v1574_v26  ;;  %1180 = vmatprep.subr.mxu1 %v119_v40 }
  0x79   :  { %1160 = vmatpush3.msra.mxu0 %v1574_v26  ;;  %1161 = vmatprep.mubr.msk.f32.mxu0 %vm134_vm0, %v382_v45  ;;  %v787_v26 = vld [vmem:[#allocation10 + $0x20] sm:$0xff] }
  0x7a   :  { %1181 = vmatpush3.msra.mxu1 %v119_v40  ;;  %1182 = vmatprep.mubr.msk.f32.mxu1 %vm134_vm0, %v386_v46  ;;  %v945_v46 = vld [vmem:[%s1738_s5] sm:$0x1] }
  0x7b   :  { %1162 = vmatmul.mubr.msk.f32.vlgmr.msra.gmra.mxu0 %vm134_vm0, %v383_v47  ;;  %1183 = vmatmul.mubr.msk.f32.vlgmr.msra.gmra.mxu1 %vm134_vm0, %v387_v48 }
  0x7c   :  { %1185 = vmatprep.subr.mxu0 %v1429_v0  ;;  %1196 = vmatprep.subr.mxu1 %v1429_v0 }
  0x7d   :  { %1193 = vmatprep.mubr.msk.f32.mxu0 %vm1430_vm1, %v1429_v0  ;;  %1204 = vmatprep.mubr.msk.f32.mxu1 %vm1430_vm1, %v1429_v0 }
 0x111   :  { %v207_v49 = vpop.f32.mrf.mxu0  ;;  %v1121_v50 = vpop.f32.mrf.mxu1 }
 0x113   :  { %v1643_v51 = vpop.f32.mrf.mxu0  ;;  %v290_v52 = vpop.f32.mrf.mxu1 }
 0x114   :  { %v291_v6 = vadd.f32 %v290_v52, %v207_v49 }
 0x116   :  { %v213_v53 = vpop.f32.mrf.mxu0 }
 0x117   :  { %v296_v2 = vadd.f32 %v1121_v50, %v213_v53  ;;  %v949_v50 = vld [vmem:[%s1738_s5 + $0x1] sm:$0x1]  ;;  %s1392_s5 = scalar_lea.vmem %s986_s28, 512 }
 0x118   :  { %v1645_v55 = vpop.f32.mrf.mxu0  ;;  %p1393_p11 = scmp.ne.s32.totalorder %s986_s28, %s1392_s5  ;;  %p1398_p13 = scmp.lt.s32.totalorder %s1392_s5, %s1392_s5 }
 0x11a   :  { %p1399_p0 = por %p1398_p13, %p1397_p12 }
 0x11c   :  { %p1400_p1 = pnand %p1399_p0, %p1393_p11 }
 0x125   :  { %v1142_v57 = vpop.f32.mrf.mxu0 }
 0x126   :  { %v1653_v7 = vadd.f32 %v1142_v57, %v296_v2 }
 0x127   :  { %v460_v54 = vpop.f32.mrf.mxu1  ;;  %v371_v60 = vpop.f32.mrf.mxu0 }
 0x128   :  { %v1661_v10 = vadd.f32 %v371_v60, %v291_v6  ;;  %v710_v12 = vmul.f32 %v1653_v7, %v1653_v7 }
 0x129   :  { %v1647_v56 = vpop.f32.mrf.mxu1 }
 0x12a   :  { %v709_v13 = vmul.f32 %v1661_v10, %v1661_v10 }
 0x136   :  { %v466_v58 = vpop.f32.mrf.mxu1 }
 0x138   :  { %v1649_v59 = vpop.f32.mrf.mxu1 }
 0x13b   :  { %v1163_v61 = vpop.f32.mrf.mxu0  ;;  %v1184_v63 = vpop.f32.mrf.mxu1 }
 0x13c   :  { %v549_v62 = vadd.f32 %v1163_v61, %v466_v58 }
 0x13d   :  { %v543_v1 = vpop.f32.mrf.mxu0  ;;  %v624_v5 = vpop.f32.mrf.mxu1 }
 0x13e   :  { %v1651_v3 = vadd.f32 %v1184_v63, %v549_v62  ;;  %v544_v4 = vadd.f32 %v543_v1, %v460_v54 }
 0x140   :  { %v712_v8 = vmul.f32 %v1651_v3, %v1651_v3  ;;  %v1657_v9 = vadd.f32 %v624_v5, %v544_v4  ;;  %1186 = vmatpush3.msra.mxu0 %v1651_v3 }
 0x141   :  { %1187 = vmatprep.subr.mxu0 %v1429_v0 }
 0x142   :  { %v711_v11 = vmul.f32 %v1657_v9, %v1657_v9  ;;  %1188 = vmatpush3.msra.mxu0 %v1657_v9  ;;  %1197 = vmatpush3.msra.mxu1 %v712_v8 }
 0x143   :  { %1189 = vmatprep.subr.mxu0 %v1429_v0  ;;  %1198 = vmatprep.subr.mxu1 %v1429_v0 }
 0x144   :  { %1190 = vmatpush3.msra.mxu0 %v1653_v7  ;;  %1199 = vmatpush3.msra.mxu1 %v711_v11 }
 0x145   :  { %1191 = vmatprep.subr.mxu0 %v1429_v0  ;;  %1200 = vmatprep.subr.mxu1 %v1429_v0 }
 0x146   :  { %1192 = vmatpush3.msra.mxu0 %v1661_v10  ;;  %1201 = vmatpush3.msra.mxu1 %v710_v12 }
 0x147   :  { %1194 = vmatmul.mubr.msk.f32.vlgmr.msra.gmra.mxu0 %vm635_vm2, %v1431_v15  ;;  %1202 = vmatprep.subr.mxu1 %v1429_v0 }
 0x148   :  { %1203 = vmatpush3.msra.mxu1 %v709_v13  ;;  %1207 = vmatprep.subr.mxu0 %v1429_v0 }
 0x149   :  { %1205 = vmatmul.mubr.msk.f32.vlgmr.msra.gmra.mxu1 %vm635_vm2, %v1431_v15  ;;  %1208 = vmatpush3.msra.mxu0 %v798_v14 }
 0x14a   :  { %1209 = vmatprep.subr.mxu0 %v1429_v0  ;;  %1242 = vmatprep.subr.mxu1 %v1429_v0 }
 0x14b   :  { %1210 = vmatpush3.msra.mxu0 %v797_v16  ;;  %1243 = vmatpush3.msra.mxu1 %v798_v14 }
 0x14c   :  { %1211 = vmatprep.subr.mxu0 %v1429_v0  ;;  %1244 = vmatprep.subr.mxu1 %v1429_v0 }
 0x14d   :  { %1212 = vmatpush3.msra.mxu0 %v796_v17  ;;  %1245 = vmatpush3.msra.mxu1 %v797_v16 }
 0x14e   :  { %1213 = vmatprep.subr.mxu0 %v1429_v0  ;;  %1246 = vmatprep.subr.mxu1 %v1429_v0 }
 0x14f   :  { %1214 = vmatpush3.msra.mxu0 %v795_v18  ;;  %1247 = vmatpush3.msra.mxu1 %v796_v17 }
 0x150   :  { %1215 = vmatprep.subr.mxu0 %v1429_v0  ;;  %1248 = vmatprep.subr.mxu1 %v1429_v0 }
 0x151   :  { %1216 = vmatpush3.msra.mxu0 %v794_v19  ;;  %1249 = vmatpush3.msra.mxu1 %v795_v18 }
 0x152   :  { %1217 = vmatprep.subr.mxu0 %v1429_v0  ;;  %1250 = vmatprep.subr.mxu1 %v1429_v0 }
 0x153   :  { %1218 = vmatpush3.msra.mxu0 %v793_v20  ;;  %1251 = vmatpush3.msra.mxu1 %v794_v19 }
 0x154   :  { %1219 = vmatprep.subr.mxu0 %v1429_v0  ;;  %1252 = vmatprep.subr.mxu1 %v1429_v0 }
 0x155   :  { %1220 = vmatpush3.msra.mxu0 %v792_v21  ;;  %1253 = vmatpush3.msra.mxu1 %v793_v20 }
 0x156   :  { %1221 = vmatprep.subr.mxu0 %v1429_v0  ;;  %1254 = vmatprep.subr.mxu1 %v1429_v0 }
 0x157   :  { %1222 = vmatpush3.msra.mxu0 %v791_v22  ;;  %1255 = vmatpush3.msra.mxu1 %v792_v21 }
 0x158   :  { %1223 = vmatprep.subr.mxu0 %v1429_v0  ;;  %1256 = vmatprep.subr.mxu1 %v1429_v0 }
 0x159   :  { %1224 = vmatpush3.msra.mxu0 %v790_v23  ;;  %1257 = vmatpush3.msra.mxu1 %v791_v22 }
 0x15a   :  { %1225 = vmatprep.subr.mxu0 %v1429_v0  ;;  %1258 = vmatprep.subr.mxu1 %v1429_v0 }
 0x15b   :  { %1226 = vmatpush3.msra.mxu0 %v789_v24  ;;  %1259 = vmatpush3.msra.mxu1 %v790_v23 }
 0x15c   :  { %1227 = vmatprep.subr.mxu0 %v1429_v0  ;;  %1260 = vmatprep.subr.mxu1 %v1429_v0 }
 0x15d   :  { %1228 = vmatpush3.msra.mxu0 %v788_v25  ;;  %1261 = vmatpush3.msra.mxu1 %v789_v24 }
 0x15e   :  { %1229 = vmatprep.subr.mxu0 %v1429_v0  ;;  %1262 = vmatprep.subr.mxu1 %v1429_v0 }
 0x15f   :  { %1230 = vmatpush3.msra.mxu0 %v787_v26  ;;  %1263 = vmatpush3.msra.mxu1 %v788_v25 }
 0x160   :  { %1231 = vmatprep.subr.mxu0 %v1429_v0  ;;  %1264 = vmatprep.subr.mxu1 %v1429_v0 }
 0x161   :  { %1232 = vmatpush3.msra.mxu0 %v786_v27  ;;  %1265 = vmatpush3.msra.mxu1 %v787_v26 }
 0x162   :  { %1233 = vmatprep.subr.mxu0 %v1429_v0  ;;  %1266 = vmatprep.subr.mxu1 %v1429_v0 }
 0x163   :  { %1234 = vmatpush3.msra.mxu0 %v785_v28  ;;  %1267 = vmatpush3.msra.mxu1 %v786_v27 }
 0x164   :  { %1235 = vmatprep.subr.mxu0 %v1429_v0  ;;  %1268 = vmatprep.subr.mxu1 %v1429_v0 }
 0x165   :  { %1236 = vmatpush3.msra.mxu0 %v784_v29  ;;  %1269 = vmatpush3.msra.mxu1 %v785_v28 }
 0x166   :  { %1237 = vmatprep.subr.mxu0 %v1429_v0  ;;  %1270 = vmatprep.subr.mxu1 %v1429_v0 }
 0x167   :  { %1239 = vmatprep.mubr.msk.f32.mxu0 %vm1430_vm1, %v1429_v0  ;;  %1271 = vmatpush3.msra.mxu1 %v784_v29 }
 0x168   :  { %1272 = vmatprep.subr.mxu1 %v1429_v0  ;;  %1274 = vmatprep.mubr.msk.f32.mxu1 %vm1430_vm1, %v1429_v0  ;;  %v952_v0 = vlaneseq }
 0x169   :  { %1238 = vmatpush3.msra.mxu0 %v783_v30  ;;  %1273 = vmatpush3.msra.mxu1 %v783_v30 }
 0x16a   :  { %v953_v45 = vshrl.u32 %v952_v0, 7 }
 0x16c   :  { %v954_v47 = vsub.s32 0, %v953_v45 }
 0x207   :  { %v705_v31 = vpop.f32.mrf.mxu0 }
 0x208   :  { %1240 = vmatmul.mubr.f32.vlgmr.msra.gmra.mxu0 %v705_v31 }
 0x209   :  { %v1195_v32 = vpop.f32.mrf.mxu0  ;;  %v779_v33 = vpop.f32.mrf.mxu1 }
 0x20a   :  { %1275 = vmatmul.mubr.f32.vlgmr.msra.gmra.mxu1 %v779_v33 }
 0x20b   :  { %v1206_v34 = vpop.f32.mrf.mxu1 }
 0x2c8   :  { %v865_v35 = vpop.f32.mrf.mxu0 }
 0x2c9   :  { %v870_v36 = vmul.f32 0.001953125, %v865_v35 }
 0x2ca   :  { %v1241_v37 = vpop.f32.mrf.mxu0  ;;  %v937_v38 = vpop.f32.mrf.mxu1 }
 0x2cb   :  { %v942_v39 = vmul.f32 %v870_v36, %v870_v36  ;;  %v941_v40 = vmul.f32 0.001953125, %v937_v38 }
 0x2cc   :  { %v1276_v41 = vpop.f32.mrf.mxu1 }
 0x2cd   :  { %v943_v42 = vsub.f32 %v941_v40, %v942_v39 }
 0x2cf   :  { %v944_v43 = vmax.f32 %v943_v42, 0.0 }
 0x2d1   :  { %v946_v44 = vadd.f32 1e-05, %v944_v43 }
 0x2d3   :  { %1290 = vrsqrt.f32 %v946_v44 }
 0x2e0   :  { %v1291_v48 = vpop.eup %1290 }
 0x2e1   :  { %v948_v49 = vmul.f32 %v1291_v48, %v945_v46 }
 0x2e3   :  { %v950_v52 = vmul.f32 %v948_v49, %v870_v36  ;;  %v955_v53 = vrot.slane %v948_v49, %v954_v47 }
 0x2e5   :  { %v951_v54 = vsub.f32 %v949_v50, %v950_v52  ;;  %v956_v57 = vmul.f32 %v955_v53, %v1661_v10  ;;  %v957_v58 = vmul.f32 %v955_v53, %v1653_v7  ;;  %v958_v60 = vmul.f32 %v955_v53, %v1657_v9 }
 0x2e6   :  { %v959_v61 = vmul.f32 %v955_v53, %v1651_v3 }
 0x2e7   :  { %v963_v62 = vrot.slane %v951_v54, %v954_v47 }
 0x2e9   :  { %v964_v63 = vadd.f32 %v963_v62, %v956_v57  ;;  %v965_v1 = vadd.f32 %v963_v62, %v957_v58  ;;  %v966_v2 = vadd.f32 %v963_v62, %v958_v60  ;;  %v967_v4 = vadd.f32 %v963_v62, %v959_v61 }
 0x2eb   :  { %v968_v5 = vadd.f32 %v964_v63, %v1643_v51  ;;  %v969_v6 = vadd.f32 %v965_v1, %v1645_v55  ;;  %v970_v8 = vadd.f32 %v966_v2, %v1647_v56  ;;  %v971_v10 = vadd.f32 %v967_v4, %v1649_v59 }
 0x2ed   :  { %v972_v7 = vmax.f32 %v968_v5, 0.0  ;;  %v973_v11 = vmax.f32 %v969_v6, 0.0  ;;  %v974_v9 = vmax.f32 %v970_v8, 0.0  ;;  %v975_v12 = vmax.f32 %v971_v10, 0.0 }
 0x2ef   :  { %976 = vst [vmem:[#allocation11] sm:$0xff] %v972_v7  ;;  %977 = vst [vmem:[#allocation11 + $0x8] sm:$0xff] %v973_v11 }
 0x2f0   :  { %978 = vst [vmem:[#allocation11 + $0x10] sm:$0xff] %v974_v9  ;;  %979 = vst [vmem:[#allocation11 + $0x18] sm:$0xff] %v975_v12 }
 0x2f1   :  { %1403 = shalt.err (!%p1400_p1)
}
 0x2f2   :  { %991 = dma.vmem_to_hbm [thread:$0]  %s986_s28, 512, %s1739_s6, [#allocation4], %s1422_s26, %s1422_s26, %s1423_s27  }
 0x2f3   :  { %1418 = dma.done.wait [#allocation4], 512  }
 0x2f4   :  { %1419 = vsyncadd [#allocation4], 4294966784 }
 0x2f5   :  { %995 = vsyncpa [#allocation3], 1 }
 0x2f6   :  { %996 = vsyncpa [#allocation6], 1 }
 0x2f7   :  { %997 = vsyncpa [#allocation9], 1 }
 0x2f8   :  { %998 = vsyncpa [#allocation4], 1 }

</bundles_post_ra>
